<compile_context>
chip_gen: v7x
topology: tpu7x:2x2x1
jax: 0.10.0
libtpu: 0.0.40
codegen_flags: <defaults>
</compile_context>

<pallas_src>
import functools

import jax
import jax.numpy as jnp
from jax.experimental import pallas as pl
from jax.experimental.pallas import tpu as pltpu

EPS = 1e-5
LANE = 128


# ------------------------------------------------------------------- hw / tiling helpers
def _vmem_capacity_bytes():
    """Physical VMEM per TensorCore; conservative fallback if the query fails."""
    try:
        cap = getattr(pltpu.get_tpu_info(), "vmem_capacity_bytes", None)
        if cap:
            return int(cap)
    except Exception:
        pass
    return 64 * 1024 * 1024  # v7x per-TC VMEM (smallest of v5e/v6e/v7x)


def _pick_tile(dim, target, *, min_tiles=1, align=LANE):
    """Largest multiple of 128 that divides `dim` and is <= target.

    With min_tiles=2 the tile is capped at dim//2 (when possible) so the
    'parallel' grid axis has >=2 tiles for v7x's two TensorCores. For
    power-of-two production dims this naturally yields 256-aligned tiles
    (full 2x256^2 MXU passes, unmasked lane-dense stores).
    """
    assert dim % align == 0, dim
    if min_tiles > 1 and dim >= min_tiles * align:
        target = min(target, dim // min_tiles)
    target = max(align, min(target, dim))
    best = align
    t = align
    while t <= target:
        if dim % t == 0:
            best = t
        t += align
    return best


def _choose_tiling(B, K, N, out_itemsize, budget):
    """Return (tn, tk, resident_x) sized against the VMEM budget.

    resident_x: whole (B, K) bf16 activation matrix held in VMEM (DMA'd once),
    instead of being re-streamed from HBM once per N-tile.
    """
    tn = _pick_tile(N, 1024, min_tiles=2)
    # accumulator + double-buffered output tile + double-buffered gamma/beta
    fixed = B * tn * 4 + 2 * B * tn * out_itemsize + 4 * 2 * tn * 4

    def usage(tk, resident):
        u = fixed + 2 * tk * tn * 2                      # double-buffered bf16 W tile
        u += (2 * B * K * 2) if resident else (2 * B * tk * 2)
        return u

    for resident, targets in ((True, (2048, 1024, 512)),
                              (False, (2048, 1024, 512, 256, 128))):
        for target in targets:
            tk = _pick_tile(K, target)
            if usage(tk, resident) <= budget:
                return tn, tk, resident
    return tn, _pick_tile(K, 128), False


# ------------------------------------------------------------------------------- kernels
def _make_kernel(with_bn, resident_x, tk):
    """One (N-tile, K-tile) grid step of y = [relu(batchnorm(.))] (x @ W)."""

    def kernel(x_ref, w_ref, *rest):
        if with_bn:
            g_ref, b_ref, o_ref, acc_ref = rest
        else:
            o_ref, acc_ref = rest

        k = pl.program_id(1)

        @pl.when(k == 0)
        def _():
            acc_ref[...] = jnp.zeros_like(acc_ref)

        if resident_x:
            # Full (B, K) activations are resident in VMEM (DMA'd once); slice the
            # lane-aligned K chunk for this reduction step.
            xk = x_ref[:, pl.ds(pl.multiple_of(k * tk, tk), tk)]
        else:
            xk = x_ref[...]

        # bf16 operands, f32 accumulation on the MXU.
        acc_ref[...] += jnp.dot(xk, w_ref[...], preferred_element_type=jnp.float32)

        @pl.when(k == pl.num_programs(1) - 1)
        def _():
            h = acc_ref[...]                                      # (B, tn) f32
            if with_bn:
                # Batch stays whole inside the kernel -> exact BN stats per feature.
                mean = jnp.mean(h, axis=0, keepdims=True)
                centered = h - mean
                var = jnp.mean(centered * centered, axis=0, keepdims=True)
                # Fold gamma into the normalization scale: one fused mul-add.
                scale = g_ref[...] * jax.lax.rsqrt(var + EPS)
                h = jnp.maximum(centered * scale + b_ref[...], 0.0)
            o_ref[...] = h.astype(o_ref.dtype)

    return kernel


# ------------------------------------------------------------------------------ wrappers
def _tiled_layer(x, w, gamma=None, beta=None, *, out_dtype):
    """Tiled (over N and K) layer; batch is kept whole for exact BN statistics."""
    B, K = x.shape
    K2, N = w.shape
    assert K == K2, (K, K2)
    assert K % LANE == 0 and N % LANE == 0, "feature dims must be multiples of 128"

    vmem_cap = _vmem_capacity_bytes()
    vmem_limit = int(vmem_cap * 0.75)       # ~48 MiB on v7x, ~96 MiB on v5e/v6e
    budget = int(vmem_limit * 0.85)         # headroom for compiler-internal scratch

    out_itemsize = jnp.dtype(out_dtype).itemsize
    tn, tk, resident = _choose_tiling(B, K, N, out_itemsize, budget)
    grid = (N // tn, K // tk)

    if resident:
        x_spec = pl.BlockSpec((B, K), lambda j, k: (0, 0))   # constant index -> one DMA
    else:
        x_spec = pl.BlockSpec((B, tk), lambda j, k: (0, k))
    w_spec = pl.BlockSpec((tk, tn), lambda j, k: (k, j))
    out_spec = pl.BlockSpec((B, tn), lambda j, k: (0, j))
    scratch = [pltpu.VMEM((B, tn), jnp.float32)]

    with_bn = gamma is not None
    kernel = _make_kernel(with_bn, resident, tk)

    x_bytes = B * K * 2 * (1 if resident else N // tn)
    cost = pl.CostEstimate(
        flops=2 * B * K * N,
        transcendentals=N if with_bn else 0,
        bytes_accessed=x_bytes + K * N * 2 + B * N * out_itemsize
        + (2 * N * 4 if with_bn else 0),
    )

    cparams = pltpu.CompilerParams(
        dimension_semantics=("parallel", "arbitrary"),
        vmem_limit_bytes=vmem_limit,
    )

    in_specs = [x_spec, w_spec]
    args = [x, w]
    if with_bn:
        v_spec = pl.BlockSpec((1, tn), lambda j, k: (0, j))
        in_specs += [v_spec, v_spec]
        args += [gamma, beta]

    return pl.pallas_call(
        kernel,
        out_shape=jax.ShapeDtypeStruct((B, N), out_dtype),
        grid_spec=pltpu.PrefetchScalarGridSpec(
            num_scalar_prefetch=0, grid=grid,
            in_specs=in_specs, out_specs=out_spec,
            scratch_shapes=scratch),
        compiler_params=cparams,
        cost_estimate=cost,
    )(*args)


def _pad_cols(a, multiple=LANE):
    pad = (-a.shape[1]) % multiple
    return jnp.pad(a, ((0, 0), (0, pad))) if pad else a


def _pad_rows(a, multiple=LANE):
    pad = (-a.shape[0]) % multiple
    return jnp.pad(a, ((0, pad), (0, 0))) if pad else a


def barlow_twins_forward(x, params):
    """x: (batch, hidden_dim) float32. Returns (batch, projector_dim) float32.

    Matmul operands are bf16 (f32 accumulation); BN/ReLU math stays f32.
    Only feature dims are zero-padded (never the batch), so BN stats stay exact.
    """
    N = params["w3"].shape[1]
    assert N % LANE == 0, "projector_dim must be a multiple of 128"

    x_bf = _pad_cols(x.astype(jnp.bfloat16))
    w1 = _pad_rows(params["w1"].astype(jnp.bfloat16))
    w2 = params["w2"].astype(jnp.bfloat16)
    w3 = params["w3"].astype(jnp.bfloat16)

    # TODO(synk): if still HBM-bound after resident-x, fuse adjacent layers
    # (keep h in VMEM across layers) on v5e/v6e where B*N*2 bytes fits.
    h = _tiled_layer(x_bf, w1, params["g1"], params["b1"], out_dtype=jnp.bfloat16)
    h = _tiled_layer(h, w2, params["g2"], params["b2"], out_dtype=jnp.bfloat16)
    return _tiled_layer(h, w3, out_dtype=jnp.float32)


# -------------------------------------------------------------------- init / reference
def init_params(key, hidden_dim, projector_dim):
    """PyTorch-default-style init: Linear U(-1/sqrt(fan_in), 1/sqrt(fan_in)),
    stored pre-transposed as (in, out); BN affine gamma=1, beta=0 as (1, N)."""
    k1, k2, k3 = jax.random.split(key, 3)

    def lin(k, fan_in, fan_out):
        bound = 1.0 / jnp.sqrt(jnp.float32(fan_in))
        return jax.random.uniform(k, (fan_in, fan_out), jnp.float32,
                                  minval=-bound, maxval=bound)

    return {
        "w1": lin(k1, hidden_dim, projector_dim),
        "g1": jnp.ones((1, projector_dim), jnp.float32),
        "b1": jnp.zeros((1, projector_dim), jnp.float32),
        "w2": lin(k2, projector_dim, projector_dim),
        "g2": jnp.ones((1, projector_dim), jnp.float32),
        "b2": jnp.zeros((1, projector_dim), jnp.float32),
        "w3": lin(k3, projector_dim, projector_dim),
    }


def reference_forward(x, p):
    """Pure-JAX reference with the same bf16-operand / f32-accumulation recipe."""
    def mm(a, w):
        return jnp.dot(a.astype(jnp.bfloat16), w.astype(jnp.bfloat16),
                       preferred_element_type=jnp.float32)

    def bn_relu(h, g, b):
        m = jnp.mean(h, axis=0, keepdims=True)
        c = h - m
        v = jnp.mean(c * c, axis=0, keepdims=True)
        return jnp.maximum(c * (g * jax.lax.rsqrt(v + EPS)) + b, 0.0)

    h = bn_relu(mm(x, p["w1"]), p["g1"], p["b1"]).astype(jnp.bfloat16)
    h = bn_relu(mm(h, p["w2"]), p["g2"], p["b2"]).astype(jnp.bfloat16)
    return mm(h, p["w3"])


if __name__ == "__main__":
    # Small shapes consistent with the module:
    # args.hidden_dim = 32 -> projector_dim = 128, projection_layers = 3, batch = 8.
    batch = 8
    hidden_dim = 32
    projector_dim = hidden_dim * 4

    key = jax.random.PRNGKey(0)
    kx, kp = jax.random.split(key)
    x = jax.random.normal(kx, (batch, hidden_dim), jnp.float32)
    params = init_params(kp, hidden_dim, projector_dim)

    out = barlow_twins_forward(x, params)
    out = jax.block_until_ready(out)

    ref = reference_forward(x, params)
    assert out.shape == (batch, projector_dim)
    assert jnp.allclose(out, ref, atol=2e-2, rtol=2e-2), "mismatch vs JAX reference"

    # TODO(synk): get_loss (cross-correlation on/off-diagonal loss) and the
    # affine=False BatchNorm `self.bn` are not part of forward(); only the
    # projector hot path is implemented as Pallas kernels. BN running-stats
    # updates (eval mode) are also not modeled — training-mode batch stats only.
    print("KERNEL_OK")
</pallas_src>

<mosaic_0001>
module attributes {stable_mosaic.version = 11 : i64} {
  func.func @kernel(%arg0: i32, %arg1: i32, %arg2: memref<8x128xbf16, #tpu.memory_space<vmem>>, %arg3: memref<128x128xbf16, #tpu.memory_space<vmem>>, %arg4: memref<1x128xf32, #tpu.memory_space<vmem>>, %arg5: memref<1x128xf32, #tpu.memory_space<vmem>>, %arg6: memref<8x128xbf16, #tpu.memory_space<vmem>>, %arg7: memref<8x128xf32, #tpu.memory_space<vmem>>) attributes {dimension_semantics = [#tpu.dimension_semantics<parallel>, #tpu.dimension_semantics<arbitrary>], iteration_bounds = array<i64: 1, 1>, scalar_prefetch = 0 : i64, scratch_operands = 1 : i64, tpu.core_type = #tpu.core_type<tc>, window_params = [{pipeline_mode = #tpu.pipeline_mode<synchronous>, transform_indices = @transform_0, window_bounds = array<i64: 8, 128>}, {transform_indices = @transform_1, window_bounds = array<i64: 128, 128>}, {transform_indices = @transform_2, window_bounds = array<i64: 1, 128>}, {transform_indices = @transform_3, window_bounds = array<i64: 1, 128>}, {transform_indices = @transform_4, window_bounds = array<i64: 8, 128>}]} {
    %c0_i32 = arith.constant 0 : i32
    %0 = arith.cmpi eq, %arg1, %c0_i32 : i32
    %1 = arith.extui %0 : i1 to i32
    %c0_i32_0 = arith.constant 0 : i32
    %2 = arith.cmpi ne, %1, %c0_i32_0 : i32
    scf.if %2 {
      %cst_9 = arith.constant 0.000000e+00 : f32
      %15 = vector.broadcast %cst_9 : f32 to vector<8x128xf32>
      %c0_10 = arith.constant 0 : index
      %c0_11 = arith.constant 0 : index
      %16 = vector.load %arg7[%c0_10, %c0_11] : memref<8x128xf32, #tpu.memory_space<vmem>>, vector<8x128xf32>
      tpu.vector_store %arg7[%c0_10, %c0_11], %15 {strides = array<i32>} : memref<8x128xf32, #tpu.memory_space<vmem>>, vector<8x128xf32>,
    } else {
    }
    %c128_i32 = arith.constant 128 : i32
    %3 = arith.muli %arg1, %c128_i32 : i32
    %4 = tpu.assume_multiple %3, 128 : i32
    %c0 = arith.constant 0 : index
    %5 = arith.index_cast %4 : i32 to index
    %6 = vector.load %arg2[%c0, %5] : memref<8x128xbf16, #tpu.memory_space<vmem>>, vector<8x128xbf16>
    %c0_1 = arith.constant 0 : index
    %c0_2 = arith.constant 0 : index
    %7 = vector.load %arg7[%c0_1, %c0_2] : memref<8x128xf32, #tpu.memory_space<vmem>>, vector<8x128xf32>
    %c0_3 = arith.constant 0 : index
    %c0_4 = arith.constant 0 : index
    %8 = vector.load %arg3[%c0_3, %c0_4] : memref<128x128xbf16, #tpu.memory_space<vmem>>, vector<128x128xbf16>
    %cst = arith.constant dense<0.000000e+00> : vector<8x128xf32>
    %9 = tpu.matmul %6, %8, %cst {dimension_numbers = #tpu.dot_dimension_numbers<[1], [0], [0], [1], [0, 0, 1, 1], [], []>} : vector<8x128xbf16>, vector<128x128xbf16>, vector<8x128xf32> -> vector<8x128xf32>
    %10 = arith.addf %7, %9 : vector<8x128xf32>
    %c0_5 = arith.constant 0 : index
    %c0_6 = arith.constant 0 : index
    %11 = vector.load %arg7[%c0_5, %c0_6] : memref<8x128xf32, #tpu.memory_space<vmem>>, vector<8x128xf32>
    tpu.vector_store %arg7[%c0_5, %c0_6], %10 {strides = array<i32>} : memref<8x128xf32, #tpu.memory_space<vmem>>, vector<8x128xf32>,
    %c0_i32_7 = arith.constant 0 : i32
    %12 = arith.cmpi eq, %arg1, %c0_i32_7 : i32
    %13 = arith.extui %12 : i1 to i32
    %c0_i32_8 = arith.constant 0 : i32
    %14 = arith.cmpi ne, %13, %c0_i32_8 : i32
    scf.if %14 {
      %c0_9 = arith.constant 0 : index
      %c0_10 = arith.constant 0 : index
      %15 = vector.load %arg7[%c0_9, %c0_10] : memref<8x128xf32, #tpu.memory_space<vmem>>, vector<8x128xf32>
      %cst_11 = arith.constant dense<0.000000e+00> : vector<128xf32>
      %16 = vector.multi_reduction <add>, %15, %cst_11 [0] : vector<8x128xf32> to vector<128xf32>
      %17 = vector.shape_cast %16 : vector<128xf32> to vector<1x128xf32>
      %cst_12 = arith.constant 8.000000e+00 : f32
      %18 = vector.broadcast %cst_12 : f32 to vector<1x128xf32>
      %19 = arith.divf %17, %18 : vector<1x128xf32>
      %20 = vector.broadcast %19 : vector<1x128xf32> to vector<8x128xf32>
      %21 = arith.subf %15, %20 : vector<8x128xf32>
      %22 = arith.mulf %21, %21 : vector<8x128xf32>
      %cst_13 = arith.constant dense<0.000000e+00> : vector<128xf32>
      %23 = vector.multi_reduction <add>, %22, %cst_13 [0] : vector<8x128xf32> to vector<128xf32>
      %24 = vector.shape_cast %23 : vector<128xf32> to vector<1x128xf32>
      %cst_14 = arith.constant 8.000000e+00 : f32
      %25 = vector.broadcast %cst_14 : f32 to vector<1x128xf32>
      %26 = arith.divf %24, %25 : vector<1x128xf32>
      %c0_15 = arith.constant 0 : index
      %c0_16 = arith.constant 0 : index
      %27 = vector.load %arg4[%c0_15, %c0_16] : memref<1x128xf32, #tpu.memory_space<vmem>>, vector<1x128xf32>
      %cst_17 = arith.constant 9.99999974E-6 : f32
      %28 = vector.broadcast %cst_17 : f32 to vector<1x128xf32>
      %29 = arith.addf %26, %28 : vector<1x128xf32>
      %30 = math.rsqrt %29 : vector<1x128xf32>
      %31 = arith.mulf %27, %30 : vector<1x128xf32>
      %32 = vector.broadcast %31 : vector<1x128xf32> to vector<8x128xf32>
      %33 = arith.mulf %21, %32 : vector<8x128xf32>
      %c0_18 = arith.constant 0 : index
      %c0_19 = arith.constant 0 : index
      %34 = vector.load %arg5[%c0_18, %c0_19] : memref<1x128xf32, #tpu.memory_space<vmem>>, vector<1x128xf32>
      %35 = vector.broadcast %34 : vector<1x128xf32> to vector<8x128xf32>
      %36 = arith.addf %33, %35 : vector<8x128xf32>
      %cst_20 = arith.constant 0.000000e+00 : f32
      %37 = vector.broadcast %cst_20 : f32 to vector<8x128xf32>
      %38 = arith.maximumf %36, %37 : vector<8x128xf32>
      %39 = arith.truncf %38 : vector<8x128xf32> to vector<8x128xbf16>
      %c0_21 = arith.constant 0 : index
      %c0_22 = arith.constant 0 : index
      %40 = vector.load %arg6[%c0_21, %c0_22] : memref<8x128xbf16, #tpu.memory_space<vmem>>, vector<8x128xbf16>
      tpu.vector_store %arg6[%c0_21, %c0_22], %39 {strides = array<i32>} : memref<8x128xbf16, #tpu.memory_space<vmem>>, vector<8x128xbf16>,
    } else {
    }
    return
  }
  func.func @transform_0(%arg0: i32, %arg1: i32) -> (i32, i32) {
    %c0_i32 = arith.constant 0 : i32
    %c0_i32_0 = arith.constant 0 : i32
    %c0_i32_1 = arith.constant 0 : i32
    return %c0_i32, %c0_i32_0 : i32, i32
  }
  func.func @transform_1(%arg0: i32, %arg1: i32) -> (i32, i32) {
    %c0_i32 = arith.constant 0 : i32
    return %arg1, %arg0 : i32, i32
  }
  func.func @transform_2(%arg0: i32, %arg1: i32) -> (i32, i32) {
    %c0_i32 = arith.constant 0 : i32
    %c0_i32_0 = arith.constant 0 : i32
    return %c0_i32, %arg0 : i32, i32
  }
  func.func @transform_3(%arg0: i32, %arg1: i32) -> (i32, i32) {
    %c0_i32 = arith.constant 0 : i32
    %c0_i32_0 = arith.constant 0 : i32
    return %c0_i32, %arg0 : i32, i32
  }
  func.func @transform_4(%arg0: i32, %arg1: i32) -> (i32, i32) {
    %c0_i32 = arith.constant 0 : i32
    %c0_i32_0 = arith.constant 0 : i32
    return %c0_i32, %arg0 : i32, i32
  }
}

</mosaic_0001>

<bundles_post_ra>
// kernel: tpu_custom_call.1
= control target key start
LH: loop header
LB: loop body
LE: loop exit
PB: predicated region body
PF: predicated region fallthrough
CT: control target
= control target key end

     0   :  { %9 = vsyncpa [#allocation4], 0  ;;  %s432_s0 = inlined_call_operand.hbm [shape: bf16[8,128], index: 0, kind: input, shape index: {}]   ;;  %s433_s1 = inlined_call_operand.hbm [shape: bf16[128,128], index: 1, kind: input, shape index: {}]   ;;  %s434_s2 = inlined_call_operand.vmem [shape: f32[1,128], index: 2, kind: input, shape index: {}]   ;;  %s435_s3 = inlined_call_operand.vmem [shape: f32[1,128], index: 3, kind: input, shape index: {}]   ;;  %s436_s4 = inlined_call_operand.hbm [shape: bf16[8,128], index: 4, kind: output, shape index: {}]  }
   0x1   :  { %10 = vsyncpa [#allocation7], 0 }
   0x2   :  { %11 = vsyncpa [#allocation5], 0  ;;  %s351_s15 = smov [#allocation3]   ;;  %s352_s17 = smov [#allocation6]  }
   0x3   :  { %s18_s16 = sshll.u32 %s351_s15, 4  ;;  %s27_s18 = sshll.u32 %s352_s17, 4  ;;  %s19_s16 = int_to_ptr.vmem [resolvable:$true] %s18_s16  ;;  %s383_s18 = int_to_ptr.vmem [resolvable:$true] %s27_s18 }
   0x4   :  { %s279_s21 = scalar_lea.hbm %s432_s0, 64 }
   0x5   :  { %p280_p0 = scmp.ne.s32.totalorder %s432_s0, %s279_s21  ;;  %p283_p1 = scmp.lt.u32.totalorder %s279_s21, %s432_s0 }
   0x7   :  { %p285_p2 = pnand %p283_p1, %p280_p0 }
   0x9   :  { %288 = shalt.err (!%p285_p2)
}
   0xa   :  { %s289_s26 = scalar_lea.vmem %s19_s16, 64  ;;  %p294_p4 = scmp.lt.s32.totalorder %s19_s16, %s19_s16 }
   0xb   :  { %p290_p3 = scmp.ne.s32.totalorder %s19_s16, %s289_s26  ;;  %p295_p5 = scmp.lt.s32.totalorder %s289_s26, %s289_s26 }
   0xd   :  { %p296_p6 = por %p295_p5, %p294_p4 }
   0xf   :  { %p297_p7 = pnand %p296_p6, %p290_p3 }
  0x11   :  { %300 = shalt.err (!%p297_p7)
}
  0x12   :  { %21 = dma.hbm_to_vmem [thread:$0]  %s432_s0, 64, %s19_s16, [#allocation4]  }
  0x13   :  { %s301_s5 = scalar_lea.hbm %s433_s1, 1024 }
  0x14   :  { %p302_p8 = scmp.ne.s32.totalorder %s433_s1, %s301_s5  ;;  %p305_p9 = scmp.lt.u32.totalorder %s301_s5, %s433_s1 }
  0x16   :  { %p307_p10 = pnand %p305_p9, %p302_p8 }
  0x18   :  { %310 = shalt.err (!%p307_p10)
}
  0x19   :  { %s311_s10 = scalar_lea.vmem %s383_s18, 1024  ;;  %p316_p12 = scmp.lt.s32.totalorder %s383_s18, %s383_s18 }
  0x1a   :  { %p312_p11 = scmp.ne.s32.totalorder %s383_s18, %s311_s10  ;;  %p317_p13 = scmp.lt.s32.totalorder %s311_s10, %s311_s10 }
  0x1c   :  { %p318_p0 = por %p317_p13, %p316_p12 }
  0x1e   :  { %p319_p1 = pnand %p318_p0, %p312_p11 }
  0x20   :  { %322 = shalt.err (!%p319_p1)
}
  0x21   :  { %s353_s0 = smov 64   ;;  %s354_s11 = smov 4  }
  0x22   :  { %33 = dma.hbm_to_vmem [thread:$0]  %s433_s1, 1024, %s383_s18, [#allocation7], %s353_s0, %s353_s0, %s354_s11  }
  0x23   :  { %345 = dma.done.wait [#allocation4], 64  }
  0x24   :  { %346 = vsyncadd [#allocation4], 4294967232 }
  0x25   :  { %347 = dma.done.wait [#allocation7], 1024  }
  0x26   :  { %348 = vsyncadd [#allocation7], 4294966272  ;;  %v355_v0 = vmov 0.0   ;;  %vm356_vm0 = vmmov 0   ;;  %v269_v1 = vld [vmem:[#allocation6] sm:$0xff]   ;;  %v270_v2 = vld [vmem:[#allocation6 + $0x8] sm:$0xff]   ;;  %v189_v31 = vlaneseq }
  0x27   :  { %242 = vmatprep.subr.bf16.mxu0 %v355_v0  ;;  %258 = vmatprep.mubr.msk.bf16.mxu0 %vm356_vm0, %v355_v0  ;;  %v271_v3 = vld [vmem:[#allocation6 + $0x10] sm:$0xff]   ;;  %v272_v4 = vld [vmem:[#allocation6 + $0x18] sm:$0xff]   ;;  %v273_v5 = vld [vmem:[#allocation6 + $0x20] sm:$0xff]   ;;  %s357_s17 = smov [#allocation8]  }
  0x28   :  { %243 = vmatpush3.bf16.msra.mxu0 %v269_v1  ;;  %v274_v6 = vld [vmem:[#allocation6 + $0x28] sm:$0xff]   ;;  %v275_v7 = vld [vmem:[#allocation6 + $0x30] sm:$0xff]   ;;  %v276_v8 = vld [vmem:[#allocation6 + $0x38] sm:$0xff]   ;;  %v190_v32 = vshrl.u32 %v189_v31, 7  ;;  %s212_s18 = sshll.u32 %s357_s17, 4  ;;  %s213_s18 = int_to_ptr.vmem [resolvable:$true] %s212_s18 }
  0x29   :  { %244 = vmatprep.subr.bf16.mxu0 %v355_v0  ;;  %v55_v9 = vld [vmem:[#allocation3] sm:$0xf]  ;;  %s323_s19 = scalar_lea.vmem %s213_s18, 64  ;;  %p328_p3 = scmp.lt.s32.totalorder %s213_s18, %s213_s18 }
  0x2a   :  { %v184_v33 = vld [vmem:[%s434_s2] sm:$0x1]  ;;  %v191_v34 = vsub.s32 0, %v190_v32  ;;  %p324_p2 = scmp.ne.s32.totalorder %s213_s18, %s323_s19  ;;  %p329_p4 = scmp.lt.s32.totalorder %s323_s19, %s323_s19 }
  0x2b   :  { %v232_v38 = vld [vmem:[%s435_s3] ss:$0 sm:$0xff] }
  0x2c   :  { %245 = vmatpush3.bf16.msra.mxu0 %v270_v2  ;;  %p330_p5 = por %p329_p4, %p328_p3 }
  0x2d   :  { %246 = vmatprep.subr.bf16.mxu0 %v355_v0 }
  0x2e   :  { %p331_p6 = pnand %p330_p5, %p324_p2 }
  0x30   :  { %247 = vmatpush3.bf16.msra.mxu0 %v271_v3 }
  0x31   :  { %248 = vmatprep.subr.bf16.mxu0 %v355_v0 }
  0x34   :  { %249 = vmatpush3.bf16.msra.mxu0 %v272_v4 }
  0x35   :  { %250 = vmatprep.subr.bf16.mxu0 %v355_v0 }
  0x38   :  { %251 = vmatpush3.bf16.msra.mxu0 %v273_v5 }
  0x39   :  { %252 = vmatprep.subr.bf16.mxu0 %v355_v0 }
  0x3c   :  { %253 = vmatpush3.bf16.msra.mxu0 %v274_v6 }
  0x3d   :  { %254 = vmatprep.subr.bf16.mxu0 %v355_v0 }
  0x40   :  { %255 = vmatpush3.bf16.msra.mxu0 %v275_v7 }
  0x41   :  { %256 = vmatprep.subr.bf16.mxu0 %v355_v0 }
  0x44   :  { %257 = vmatpush3.bf16.msra.mxu0 %v276_v8 }
  0x47   :  { %259 = vmatmul.mubr.bf16.vlgmr.msra.gmra.mrb[0].mxu0 %v55_v9 }
 0x11a   :  { %v155_v10 = vpop.f32.mrb[0].mxu0 }
 0x11b   :  { %v167_v11 = vrot.slane %v155_v10, 4  ;;  %v260_v12 = vpop.f32.mrb[1].mxu0 }
 0x11c   :  { %v158_v13 = vpop.f32.mrb[2].mxu0 }
 0x11d   :  { %v168_v14 = vadd.f32 %v167_v11, %v155_v10  ;;  %v261_v15 = vpop.f32.mrb[3].mxu0 }
 0x11f   :  { %v169_v16 = vrot.slane %v168_v14, 2 }
 0x121   :  { %v170_v17 = vadd.f32 %v169_v16, %v168_v14 }
 0x123   :  { %v171_v18 = vrot.slane %v170_v17, 1 }
 0x125   :  { %v172_v19 = vadd.f32 %v171_v18, %v170_v17 }
 0x127   :  { %v174_v20 = vmul.f32 0.125, %v172_v19 }
 0x129   :  { %v175_v21 = vsub.f32 %v155_v10, %v174_v20 }
 0x12b   :  { %v176_v22 = vmul.f32 %v175_v21, %v175_v21 }
 0x12d   :  { %v177_v23 = vrot.slane %v176_v22, 4 }
 0x12f   :  { %v178_v24 = vadd.f32 %v177_v23, %v176_v22 }
 0x131   :  { %v179_v25 = vrot.slane %v178_v24, 2 }
 0x133   :  { %v180_v26 = vadd.f32 %v179_v25, %v178_v24 }
 0x135   :  { %v181_v27 = vrot.slane %v180_v26, 1 }
 0x137   :  { %v182_v28 = vadd.f32 %v181_v27, %v180_v26 }
 0x139   :  { %v183_v29 = vmul.f32 0.125, %v182_v28 }
 0x13b   :  { %v185_v30 = vadd.f32 1e-05, %v183_v29 }
 0x13d   :  { %277 = vrsqrt.f32 %v185_v30 }
 0x147   :  { %v278_v35 = vpop.eup %277 }
 0x148   :  { %v187_v36 = vmul.f32 %v278_v35, %v184_v33 }
 0x14a   :  { %v192_v37 = vrot.slane %v187_v36, %v191_v34 }
 0x14c   :  { %v194_v39 = vmul.f32 %v192_v37, %v175_v21 }
 0x14e   :  { %v202_v40 = vadd.f32 %v232_v38, %v194_v39 }
 0x150   :  { %v203_v41 = vmax.f32 %v202_v40, 0.0 }
 0x152   :  { %v204_v42 = vpack.c.bf16 %v203_v41, %v203_v41 }
 0x154   :  { %205 = vst [vmem:[#allocation8] sm:$0xf] %v204_v42 }
 0x155   :  { %334 = shalt.err (!%p331_p6)
}
 0x156   :  { %s335_s21 = scalar_lea.hbm %s436_s4, 64 }
 0x157   :  { %p336_p7 = scmp.ne.s32.totalorder %s436_s4, %s335_s21  ;;  %p339_p8 = scmp.lt.u32.totalorder %s335_s21, %s436_s4 }
 0x159   :  { %p341_p9 = pnand %p339_p8, %p336_p7 }
 0x15b   :  { %344 = shalt.err (!%p341_p9)
}
 0x15c   :  { %215 = dma.vmem_to_hbm [thread:$0]  %s213_s18, 64, %s436_s4, [#allocation5]  }
 0x15d   :  { %349 = dma.done.wait [#allocation5], 64  }
 0x15e   :  { %350 = vsyncadd [#allocation5], 4294967232 }
 0x15f   :  { %219 = vsyncpa [#allocation4], 1 }
 0x160   :  { %220 = vsyncpa [#allocation7], 1 }
 0x161   :  { %221 = vsyncpa [#allocation5], 1 }

</bundles_post_ra>
